<compile_context>
chip_gen: v5e
topology: v5e:2x2
jax: 0.10.0
libtpu: 0.0.40
codegen_flags: <defaults>
</compile_context>

<pallas_src>
import jax
import jax.numpy as jnp
from jax.experimental import pallas as pl
from jax.experimental.pallas import tpu as pltpu

_LANE = 128
_MAX_COLS = 32768                        # elements per flattened row (128 KiB/row for f32)
_TARGET_BLOCK_BYTES = 2 * 1024 * 1024    # ~2 MiB per block; 4x (dbl-buffered in+out) = 8 MiB VMEM


def _copy_kernel(x_ref, o_ref):
    # Elementwise pass-through of the current lane-dense row block.
    o_ref[...] = x_ref[...]


def _lane_dense_layout(total, itemsize):
    """Pick (rows, cols, block_rows) for a lane-dense 2D copy.

    cols = largest divisor of `total` that is a multiple of 128 (capped), so the
    output last dim is lane-dense (unmasked full-width stores). block_rows keeps
    each block ~2 MiB and a multiple of 8 (or the full row count), which fits the
    default scoped VMEM on v5e/v6e/v7x with double-buffered input + output.
    """
    if total % _LANE != 0:
        return None
    n_groups = total // _LANE
    max_k = max(1, min(n_groups, _MAX_COLS // _LANE))
    k = 1
    for cand in range(max_k, 0, -1):
        if n_groups % cand == 0:
            k = cand
            break
    cols = _LANE * k
    rows = total // cols

    row_bytes = cols * itemsize
    block_rows = max(1, _TARGET_BLOCK_BYTES // row_bytes)
    block_rows = (block_rows // 8) * 8
    if block_rows == 0:
        block_rows = 8
    block_rows = min(block_rows, rows)
    if block_rows != rows and block_rows % 8 != 0:
        block_rows = rows
    return rows, cols, block_rows


def _pallas_identity_copy(x2, block_rows):
    rows, cols = x2.shape
    grid = (pl.cdiv(rows, block_rows),)
    return pl.pallas_call(
        _copy_kernel,
        out_shape=jax.ShapeDtypeStruct((rows, cols), x2.dtype),
        grid=grid,
        in_specs=[pl.BlockSpec((block_rows, cols), lambda i: (i, 0))],
        out_specs=pl.BlockSpec((block_rows, cols), lambda i: (i, 0)),
        compiler_params=pltpu.CompilerParams(
            dimension_semantics=("parallel",),   # lets v7x shard the grid across its 2 TCs
        ),
    )(x2)


def rrdbnet_forward(x):
    """Pallas implementation of RRDBNet.forward (identity).

    Args:
      x: jnp.ndarray of shape (N, C, H, W), any dtype.
    Returns:
      jnp.ndarray identical to x (same shape, dtype, values).
    """
    # NOTE: for a true identity, `return x` is the zero-cost answer; the Pallas
    # copy below is kept as the kernelized data path, tuned to run near the HBM
    # roofline (lane-dense layout, ~2 MiB blocks) on v5e/v6e/v7x.
    orig_shape = x.shape
    total = x.size
    layout = _lane_dense_layout(total, x.dtype.itemsize)

    if layout is None:
        # TODO(synk): element count not a multiple of 128 — single full-array
        # block fallback (fine for small inputs; pad/split for huge odd sizes).
        x2 = x.reshape(1, total)
        out = _pallas_identity_copy(x2, 1)
        return out.reshape(orig_shape)

    rows, cols, block_rows = layout
    x2 = x.reshape(rows, cols)          # bitcast-free for contiguous NCHW input
    out = _pallas_identity_copy(x2, block_rows)
    return out.reshape(orig_shape)


# NOTE: the reference module's __init__ takes (in_nc, out_nc, nf, nb) but creates
# no layers, so there are no weights to construct here.
# TODO(synk): if the real RRDB trunk (conv_first + residual dense blocks +
# upsample convs) is added to the PyTorch module, replace this with
# conv-as-matmul Pallas kernels.


if __name__ == "__main__":
    key = jax.random.PRNGKey(0)
    # Small NCHW input consistent with a super-resolution network:
    # batch=2, in_nc=4, spatial 16x16.
    x = jax.random.normal(key, (2, 4, 16, 16), dtype=jnp.float32)

    y = rrdbnet_forward(x)
    y = jax.block_until_ready(y)

    assert y.shape == x.shape and y.dtype == x.dtype
    assert bool(jnp.array_equal(y, x))
    print("KERNEL_OK")
</pallas_src>

<mosaic_0001>
module attributes {stable_mosaic.version = 11 : i64} {
  func.func @_copy_kernel(%arg0: i32, %arg1: memref<1x2048xf32, #tpu.memory_space<vmem>>, %arg2: memref<1x2048xf32, #tpu.memory_space<vmem>>) attributes {dimension_semantics = [#tpu.dimension_semantics<parallel>], iteration_bounds = array<i64: 1>, scalar_prefetch = 0 : i64, scratch_operands = 0 : i64, tpu.core_type = #tpu.core_type<tc>, window_params = [{transform_indices = @transform_0, window_bounds = array<i64: 1, 2048>}, {transform_indices = @transform_1, window_bounds = array<i64: 1, 2048>}]} {
    %c0 = arith.constant 0 : index
    %c0_0 = arith.constant 0 : index
    %0 = vector.load %arg1[%c0, %c0_0] : memref<1x2048xf32, #tpu.memory_space<vmem>>, vector<1x2048xf32>
    %c0_1 = arith.constant 0 : index
    %c0_2 = arith.constant 0 : index
    %1 = vector.load %arg2[%c0_1, %c0_2] : memref<1x2048xf32, #tpu.memory_space<vmem>>, vector<1x2048xf32>
    tpu.vector_store %arg2[%c0_1, %c0_2], %0 {strides = array<i32>} : memref<1x2048xf32, #tpu.memory_space<vmem>>, vector<1x2048xf32>,
    return
  }
  func.func @transform_0(%arg0: i32) -> (i32, i32) {
    %c0_i32 = arith.constant 0 : i32
    %c0_i32_0 = arith.constant 0 : i32
    return %arg0, %c0_i32 : i32, i32
  }
  func.func @transform_1(%arg0: i32) -> (i32, i32) {
    %c0_i32 = arith.constant 0 : i32
    %c0_i32_0 = arith.constant 0 : i32
    return %arg0, %c0_i32 : i32, i32
  }
}

</mosaic_0001>

<bundles_post_ra>
// kernel: tpu_custom_call.1
= control target key start
LH: loop header
LB: loop body
LE: loop exit
PB: predicated region body
PF: predicated region fallthrough
CT: control target
= control target key end

     0   :  { %6 = vsyncpa [#allocation3], 0  ;;  %s116_s0 = inlined_call_operand.hbm [shape: f32[1,2048], index: 0, kind: input, shape index: {}]   ;;  %s117_s1 = inlined_call_operand.hbm [shape: f32[1,2048], index: 1, kind: output, shape index: {}]  }
   0x1   :  { %7 = vsyncpa [#allocation4], 0  ;;  %s13_s8 = sshll.u32 %s116_s0, 4  ;;  %s98_s9 = smov [#allocation2]   ;;  %s14_s8 = int_to_ptr.hbm [resolvable:$true] %s13_s8 }
   0x2   :  { %s15_s10 = sshll.u32 %s98_s9, 4  ;;  %s16_s10 = int_to_ptr.vmem [resolvable:$true] %s15_s10 }
   0x3   :  { %18 = dma.hbm_to_vmem [thread:$0]  %s14_s8, 256, %s16_s10, [#allocation3]  }
   0x4   :  { %94 = dma.done.wait [#allocation3], 256  }
   0x5   :  { %95 = vsyncadd [#allocation3], 4294967040  ;;  %s99_s11 = smov [#allocation5]   ;;  %s34_s15 = sshll.u32 %s117_s1, 4  ;;  %v23_v0 = vld [vmem:[#allocation2] sm:$0xff]  ;;  %v24_v1 = vld [vmem:[#allocation2 + $0x8] sm:$0xff]  ;;  %s35_s15 = int_to_ptr.hbm [resolvable:$true] %s34_s15 }
   0x6   :  { %s32_s12 = sshll.u32 %s99_s11, 4  ;;  %25 = vst [vmem:[#allocation5] sm:$0xff] %v23_v0  ;;  %s33_s12 = int_to_ptr.vmem [resolvable:$true] %s32_s12 }
   0x7   :  { %26 = vst [vmem:[#allocation5 + $0x8] sm:$0xff] %v24_v1 }
   0x8   :  { %37 = dma.vmem_to_hbm [thread:$0]  %s33_s12, 256, %s35_s15, [#allocation4]  }
   0x9   :  { %96 = dma.done.wait [#allocation4], 256  }
   0xa   :  { %97 = vsyncadd [#allocation4], 4294967040 }
   0xb   :  { %42 = vsyncpa [#allocation3], 1 }
   0xc   :  { %43 = vsyncpa [#allocation4], 1 }

</bundles_post_ra>
